<compile_context>
chip_gen: v6e
topology: v6e:2x2x1
jax: 0.10.0
libtpu: 0.0.40
codegen_flags: <defaults>
</compile_context>

<pallas_src>
import functools

import jax
import jax.numpy as jnp
from jax.experimental import pallas as pl
from jax.experimental.pallas import tpu as pltpu

LN_EPS = 1e-5       # nn.LayerNorm default
L2_EPS = 1e-12      # F.normalize default


# --------------------------------------------------------------------------- #
# Helpers
# --------------------------------------------------------------------------- #
def _round_up(x, m):
    return ((x + m - 1) // m) * m


def _sublane_tile(dtype):
    # Native (sublane, lane) tile second-minor extent: 8 for 4-byte dtypes,
    # 16 for 2-byte, 32 for 1-byte.
    return max(8, 32 // jnp.dtype(dtype).itemsize)


def _l2_normalize(y):
    # rsqrt(max(sumsq, eps^2)) == 1 / max(sqrt(sumsq), eps)  (sqrt is monotone);
    # rsqrt lands on the EUP slot instead of sqrt + divide on the VPU.
    sumsq = jnp.sum(y * y, axis=-1, keepdims=True)
    return y * jax.lax.rsqrt(jnp.maximum(sumsq, L2_EPS * L2_EPS))


# --------------------------------------------------------------------------- #
# Kernel bodies
# --------------------------------------------------------------------------- #
def _remap_kernel(x_ref, w_ref, o_ref):
    # x_ref : (TB, C, HW)  native-layout feature tile (e.g. bf16)
    # w_ref : (Dp, C)      remap weight, rows >= D zero-padded (grid-resident)
    # o_ref : (TB, Dp)     embedding tile, Dp a 128-multiple -> unmasked stores
    # GAP over HW (lane reduce) with the f32 widening fused into the reduction.
    pooled = jnp.mean(x_ref[...], axis=-1, dtype=jnp.float32)          # (TB, C)
    mu = jnp.mean(pooled, axis=-1, keepdims=True)
    var = jnp.mean(jnp.square(pooled - mu), axis=-1, keepdims=True)
    xn = (pooled - mu) * jax.lax.rsqrt(var + LN_EPS)                   # (TB, C) f32
    # Keep the LayerNorm output in f32 through the MXU (upcast the weight
    # in-kernel) so bf16 weights do not degrade the PyTorch-f32 Linear result.
    w = w_ref[...].astype(jnp.float32)
    y = jax.lax.dot_general(                                           # xn @ w.T
        xn, w, dimension_numbers=(((1,), (1,)), ((), ())),
        preferred_element_type=jnp.float32)                            # (TB, Dp)
    # Zero-padded weight rows contribute 0 to sumsq -> L2 norm stays exact.
    o_ref[...] = _l2_normalize(y).astype(o_ref.dtype)


def _noremap_kernel(x_ref, o_ref, *, c, c_pad):
    # input_dim == output_dim path: GAP + center + L2 normalize.
    pooled = jnp.mean(x_ref[...], axis=-1, dtype=jnp.float32)          # (TB, C)
    mu = jnp.mean(pooled, axis=-1, keepdims=True)
    # LayerNorm's row-constant rsqrt(var+eps) scale cancels under the final L2
    # normalization, so center-only + L2-normalize is equivalent (modulo the
    # eps clamps on degenerate all-constant rows).
    y = _l2_normalize(pooled - mu)                                     # (TB, C)
    if c_pad != c:  # pad lanes so the store is a full, unmasked vst
        y = jnp.concatenate(
            [y, jnp.zeros((y.shape[0], c_pad - c), y.dtype)], axis=-1)
    o_ref[...] = y.astype(o_ref.dtype)


# --------------------------------------------------------------------------- #
# VMEM budgeting
# --------------------------------------------------------------------------- #
def _vmem_budget_and_cap():
    """Returns (per-step footprint budget, vmem_limit_bytes cap) per generation."""
    phys = None
    try:
        phys = getattr(pltpu.get_tpu_info(), "vmem_capacity_bytes", None)
    except Exception:
        phys = None
    if phys is None or phys <= (64 << 20):
        # v7x: 64 MiB physical VMEM per TensorCore (32 MiB scoped default).
        # 40 MiB cap is still well past the tile-size / HBM-roofline knee.
        return 22 << 20, 40 << 20
    # v5e / v6e: 128 MiB physical VMEM -> bigger tiles, fewer grid steps.
    return 72 << 20, 100 << 20


def _footprint_bytes(tb, *, C, HW, in_dtype, out_width, out_dtype,
                     w_rows=0, w_dtype=None):
    """Padded VMEM bytes for one pipelined grid step (double buffers included)."""
    in_b = (2 * tb * _round_up(C, _sublane_tile(in_dtype))
            * _round_up(HW, 128) * jnp.dtype(in_dtype).itemsize)
    out_b = (2 * _round_up(tb, _sublane_tile(out_dtype))
             * _round_up(out_width, 128) * jnp.dtype(out_dtype).itemsize)
    # f32 intermediates: pooled / centered / xn (TB, C) + (TB, out_width) result.
    tmp_b = (4 * tb * _round_up(C, 128) * 4
             + 2 * tb * _round_up(out_width, 128) * 4)
    w_b = 0
    if w_rows:
        w_b = (2 * _round_up(w_rows, _sublane_tile(w_dtype))
               * _round_up(C, 128) * jnp.dtype(w_dtype).itemsize)
    return in_b + out_b + tmp_b + w_b


def _pick_batch_tile(B, budget, fp):
    if B <= 8 or fp(_round_up(B, 8)) <= budget:
        return B
    best, tb = 8, 16
    while tb < B:
        if fp(tb) <= budget:
            best = tb
        tb += 8
    return best


def _vmem_limit(fp_bytes, cap):
    limit = int(1.25 * fp_bytes) + (2 << 20)   # 25% + 2 MiB slack for Mosaic scratch
    if limit > cap:
        return int(limit)                      # shapes exceed the budget regardless
    return int(max(16 << 20, limit))


# --------------------------------------------------------------------------- #
# Wrapper
# --------------------------------------------------------------------------- #
def embedded_feature_wrapper(feat_map, remap_weight=None, *,
                             batch_tile=None, out_dtype=jnp.float32):
    """Fused GAP + LayerNorm(no affine) + optional Linear remap + L2 normalize.

    feat_map:     (B, C, H, W) stage-4 feature map (any float dtype, e.g. bf16),
                  consumed in its native NCHW layout (no transpose pass).
    remap_weight: (D, C) nn.Linear weight, or None when input_dim == output_dim.
    out_dtype:    embedding dtype (use jnp.bfloat16 to halve output writeback
                  when downstream tolerates it); f32 matches PyTorch exactly.
    """
    B, C, H, W = feat_map.shape
    HW = H * W
    x = feat_map.reshape(B, C, HW)           # free reshape: C on sublanes, HW on lanes

    budget, cap = _vmem_budget_and_cap()

    if remap_weight is not None:
        D = remap_weight.shape[0]
        d_pad = _round_up(D, 128)            # lane-dense output stores
        w = remap_weight
        if d_pad != D:
            w = jnp.zeros((d_pad, C), w.dtype).at[:D].set(w)

        fp = functools.partial(_footprint_bytes, C=C, HW=HW, in_dtype=x.dtype,
                               out_width=d_pad, out_dtype=out_dtype,
                               w_rows=d_pad, w_dtype=w.dtype)
        tb = batch_tile if batch_tile is not None else _pick_batch_tile(B, budget, fp)
        tb = max(1, min(tb, B))
        grid = (pl.cdiv(B, tb),)             # ragged tail safe: all math is per-row

        out = pl.pallas_call(
            _remap_kernel,
            out_shape=jax.ShapeDtypeStruct((B, d_pad), out_dtype),
            grid=grid,
            in_specs=[
                pl.BlockSpec((tb, C, HW), lambda i: (i, 0, 0)),
                pl.BlockSpec((d_pad, C), lambda i: (0, 0)),   # resident weight
            ],
            out_specs=pl.BlockSpec((tb, d_pad), lambda i: (i, 0)),
            compiler_params=pltpu.CompilerParams(
                dimension_semantics=("parallel",),   # megacore on v7x; no-op on 1-TC chips
                vmem_limit_bytes=_vmem_limit(fp(tb), cap)),
        )(x, w)
        return out[:, :D] if d_pad != D else out

    # input_dim == output_dim: module skips the Linear remap.
    c_pad = _round_up(C, 128)
    fp = functools.partial(_footprint_bytes, C=C, HW=HW, in_dtype=x.dtype,
                           out_width=c_pad, out_dtype=out_dtype)
    tb = batch_tile if batch_tile is not None else _pick_batch_tile(B, budget, fp)
    tb = max(1, min(tb, B))
    grid = (pl.cdiv(B, tb),)

    out = pl.pallas_call(
        functools.partial(_noremap_kernel, c=C, c_pad=c_pad),
        out_shape=jax.ShapeDtypeStruct((B, c_pad), out_dtype),
        grid=grid,
        in_specs=[pl.BlockSpec((tb, C, HW), lambda i: (i, 0, 0))],
        out_specs=pl.BlockSpec((tb, c_pad), lambda i: (i, 0)),
        compiler_params=pltpu.CompilerParams(
            dimension_semantics=("parallel",),
            vmem_limit_bytes=_vmem_limit(fp(tb), cap)),
    )(x)
    return out[:, :C] if c_pad != C else out


# --------------------------------------------------------------------------- #
# Pure-JAX reference mirroring the PyTorch forward
# --------------------------------------------------------------------------- #
def _reference(feat_map, remap_weight=None):
    B, C, H, W = feat_map.shape
    pooled = jnp.mean(feat_map.astype(jnp.float32).reshape(B, C, -1), axis=-1)
    mu = jnp.mean(pooled, axis=-1, keepdims=True)
    var = jnp.mean((pooled - mu) ** 2, axis=-1, keepdims=True)
    xn = (pooled - mu) / jnp.sqrt(var + LN_EPS)
    if remap_weight is not None:
        y = jnp.dot(xn, remap_weight.astype(jnp.float32).T,
                    precision=jax.lax.Precision.HIGHEST)
    else:
        y = xn
    n = jnp.maximum(jnp.linalg.norm(y, axis=1, keepdims=True), L2_EPS)
    return y / n


if __name__ == "__main__":
    # Small shapes: batch=16 (batch tiling: tile=8 -> grid=(2,)), channels=32,
    # spatial=7x7 (HW=49, not a 128-multiple -> exercises lane padding in the
    # VMEM budget), output_dim=16 (exercises lane padding of the output to 128).
    B, C, H, W, D = 16, 32, 7, 7, 16

    key = jax.random.PRNGKey(0)
    k_x, k_w = jax.random.split(key)
    # Feed the backbone's native bf16 directly — no wrapper-side f32 upcast.
    feat_map = jax.random.normal(k_x, (B, C, H, W), dtype=jnp.float32).astype(jnp.bfloat16)
    # nn.Linear(input_dim, output_dim, bias=False) weight shape: (D, C)
    remap_weight = (jax.random.uniform(k_w, (D, C), dtype=jnp.float32) - 0.5) * (
        2.0 / jnp.sqrt(C)
    )

    # Remap path (input_dim != output_dim), explicit batch tile of 8.
    out = jax.block_until_ready(
        embedded_feature_wrapper(feat_map, remap_weight, batch_tile=8))
    ref = _reference(feat_map, remap_weight)
    assert out.shape == (B, D)
    assert jnp.allclose(out, ref, atol=1e-4, rtol=1e-4), "mismatch vs reference (remap)"
    assert jnp.allclose(jnp.linalg.norm(out, axis=1), 1.0, atol=1e-4)

    # No-remap path (input_dim == output_dim): GAP + standardize + L2 normalize.
    out2 = jax.block_until_ready(embedded_feature_wrapper(feat_map, None, batch_tile=8))
    ref2 = _reference(feat_map, None)
    assert out2.shape == (B, C)
    assert jnp.allclose(out2, ref2, atol=1e-4, rtol=1e-4), "mismatch vs reference (no remap)"

    # Auto-tiled path (per-generation VMEM budget chooses the batch tile).
    out3 = jax.block_until_ready(embedded_feature_wrapper(feat_map, remap_weight))
    assert jnp.allclose(out3, ref, atol=1e-4, rtol=1e-4), "mismatch vs reference (auto tile)"

    print("KERNEL_OK")
</pallas_src>

<mosaic_0001>
module attributes {stable_mosaic.version = 11 : i64} {
  func.func @_remap_kernel(%arg0: i32, %arg1: memref<8x32x49xbf16, #tpu.memory_space<vmem>>, %arg2: memref<128x32xf32, #tpu.memory_space<vmem>>, %arg3: memref<8x128xf32, #tpu.memory_space<vmem>>) attributes {dimension_semantics = [#tpu.dimension_semantics<parallel>], iteration_bounds = array<i64: 2>, scalar_prefetch = 0 : i64, scratch_operands = 0 : i64, tpu.core_type = #tpu.core_type<tc>, window_params = [{transform_indices = @transform_0, window_bounds = array<i64: 8, 32, 49>}, {pipeline_mode = #tpu.pipeline_mode<synchronous>, transform_indices = @transform_1, window_bounds = array<i64: 128, 32>}, {transform_indices = @transform_2, window_bounds = array<i64: 8, 128>}]} {
    %c0 = arith.constant 0 : index
    %c0_0 = arith.constant 0 : index
    %c0_1 = arith.constant 0 : index
    %0 = vector.load %arg1[%c0, %c0_0, %c0_1] : memref<8x32x49xbf16, #tpu.memory_space<vmem>>, vector<8x32x49xbf16>
    %1 = arith.extf %0 : vector<8x32x49xbf16> to vector<8x32x49xf32>
    %cst = arith.constant dense<0.000000e+00> : vector<8x32xf32>
    %2 = vector.multi_reduction <add>, %1, %cst [2] : vector<8x32x49xf32> to vector<8x32xf32>
    %cst_2 = arith.constant 4.900000e+01 : f32
    %3 = vector.broadcast %cst_2 : f32 to vector<8x32xf32>
    %4 = arith.divf %2, %3 : vector<8x32xf32>
    %cst_3 = arith.constant dense<0.000000e+00> : vector<8xf32>
    %5 = vector.multi_reduction <add>, %4, %cst_3 [1] : vector<8x32xf32> to vector<8xf32>
    %6 = vector.shape_cast %5 : vector<8xf32> to vector<8x1xf32>
    %cst_4 = arith.constant 3.200000e+01 : f32
    %7 = vector.broadcast %cst_4 : f32 to vector<8x1xf32>
    %8 = arith.divf %6, %7 : vector<8x1xf32>
    %9 = vector.broadcast %8 : vector<8x1xf32> to vector<8x32xf32>
    %10 = arith.subf %4, %9 : vector<8x32xf32>
    %11 = arith.mulf %10, %10 : vector<8x32xf32>
    %cst_5 = arith.constant dense<0.000000e+00> : vector<8xf32>
    %12 = vector.multi_reduction <add>, %11, %cst_5 [1] : vector<8x32xf32> to vector<8xf32>
    %13 = vector.shape_cast %12 : vector<8xf32> to vector<8x1xf32>
    %cst_6 = arith.constant 3.200000e+01 : f32
    %14 = vector.broadcast %cst_6 : f32 to vector<8x1xf32>
    %15 = arith.divf %13, %14 : vector<8x1xf32>
    %16 = vector.broadcast %8 : vector<8x1xf32> to vector<8x32xf32>
    %17 = arith.subf %4, %16 : vector<8x32xf32>
    %cst_7 = arith.constant 9.99999974E-6 : f32
    %18 = vector.broadcast %cst_7 : f32 to vector<8x1xf32>
    %19 = arith.addf %15, %18 : vector<8x1xf32>
    %20 = math.rsqrt %19 : vector<8x1xf32>
    %21 = vector.broadcast %20 : vector<8x1xf32> to vector<8x32xf32>
    %22 = arith.mulf %17, %21 : vector<8x32xf32>
    %c0_8 = arith.constant 0 : index
    %c0_9 = arith.constant 0 : index
    %23 = vector.load %arg2[%c0_8, %c0_9] : memref<128x32xf32, #tpu.memory_space<vmem>>, vector<128x32xf32>
    %cst_10 = arith.constant dense<0.000000e+00> : vector<8x128xf32>
    %24 = tpu.matmul %22, %23, %cst_10 {dimension_numbers = #tpu.dot_dimension_numbers<[1], [1], [0], [0], [0, 0, 1, 0], [], []>} : vector<8x32xf32>, vector<128x32xf32>, vector<8x128xf32> -> vector<8x128xf32>
    %25 = arith.mulf %24, %24 : vector<8x128xf32>
    %cst_11 = arith.constant dense<0.000000e+00> : vector<8xf32>
    %26 = vector.multi_reduction <add>, %25, %cst_11 [1] : vector<8x128xf32> to vector<8xf32>
    %27 = vector.shape_cast %26 : vector<8xf32> to vector<8x1xf32>
    %cst_12 = arith.constant 1.000000e-24 : f32
    %28 = vector.broadcast %cst_12 : f32 to vector<8x1xf32>
    %29 = arith.maximumf %27, %28 : vector<8x1xf32>
    %30 = math.rsqrt %29 : vector<8x1xf32>
    %31 = vector.broadcast %30 : vector<8x1xf32> to vector<8x128xf32>
    %32 = arith.mulf %24, %31 : vector<8x128xf32>
    %c0_13 = arith.constant 0 : index
    %c0_14 = arith.constant 0 : index
    %33 = vector.load %arg3[%c0_13, %c0_14] : memref<8x128xf32, #tpu.memory_space<vmem>>, vector<8x128xf32>
    tpu.vector_store %arg3[%c0_13, %c0_14], %32 {strides = array<i32>} : memref<8x128xf32, #tpu.memory_space<vmem>>, vector<8x128xf32>,
    return
  }
  func.func @transform_0(%arg0: i32) -> (i32, i32, i32) {
    %c0_i32 = arith.constant 0 : i32
    %c0_i32_0 = arith.constant 0 : i32
    %c0_i32_1 = arith.constant 0 : i32
    return %arg0, %c0_i32, %c0_i32_0 : i32, i32, i32
  }
  func.func @transform_1(%arg0: i32) -> (i32, i32) {
    %c0_i32 = arith.constant 0 : i32
    %c0_i32_0 = arith.constant 0 : i32
    %c0_i32_1 = arith.constant 0 : i32
    return %c0_i32, %c0_i32_0 : i32, i32
  }
  func.func @transform_2(%arg0: i32) -> (i32, i32) {
    %c0_i32 = arith.constant 0 : i32
    %c0_i32_0 = arith.constant 0 : i32
    return %arg0, %c0_i32 : i32, i32
  }
}

</mosaic_0001>

<bundles_post_ra>
// kernel: tpu_custom_call.1
= control target key start
LH: loop header
LB: loop body
LE: loop exit
PB: predicated region body
PF: predicated region fallthrough
CT: control target
= control target key end

     0   :  { %7 = vsyncpa [#allocation3], 0  ;;  %s2764_s0 = inlined_call_operand.hbm [shape: bf16[16,32,49], index: 0, kind: input, shape index: {}]   ;;  %s2765_s1 = inlined_call_operand.vmem [shape: f32[128,32], index: 1, kind: input, shape index: {}]   ;;  %s2766_s2 = inlined_call_operand.hbm [shape: f32[16,128], index: 2, kind: output, shape index: {}]  }
   0x1   :  { %9 = vsyncpa [#allocation3 + $0x1], 0 }
   0x2   :  { %10 = vsyncpa [#allocation4], 0 }
   0x3   :  { %12 = vsyncpa [#allocation4 + $0x1], 0  ;;  %s1894_s9 = smov 0   ;;  %s1896_s10 = smov 0  }
   0x4   :  { %s1898_s11 = smov 0   ;;  %s1900_s12 = smov 0  }
   0x5 LB: > { %s1915_s13 = sadd.s32 4294967295, %s1870_s12   ;;  %s1557_s14 = sadd.s32 4294967294, %s1870_s12   ;;  %s1870_s12 = sphi %s1900_s12, %s2809_s12   ;;  %s1866_s11 = sphi %s1898_s11, %s2808_s11   ;;  %s1862_s10 = sphi %s1896_s10, %s2807_s10   ;;  %s1858_s9 = sphi %s1894_s9, %s2806_s9  }
   0x6   : > { %s1919_s15 = sadd.s32 1, %s1870_s12   ;;  %s25_s16 = sadd.s32 1, %s1866_s11 }
   0x7   : > { %s22_s17 = ssub.s32 %s1870_s12, %s1919_s15  ;;  %p32_p0 = scmp.ne.s32.totalorder %s1866_s11, %s1862_s10 }
   0x8   : > { %p23_p1 = scmp.eq.s32.totalorder %s22_s17, 0  ;;  %p33_p2 = scmp.eq.s32.totalorder %s1870_s12, 0 }
   0x9   : > { %p38_p3 = scmp.ne.s32.totalorder %s1862_s10, %s1858_s9  ;;  %p39_p4 = scmp.eq.s32.totalorder %s1915_s13, 0 }
   0xa   : > { %s1931_s18 = scalar_select %p23_p1, %s1866_s11, %s25_s16  }
   0xb   : > { %p1933_p5 = por %p33_p2, %p32_p0  ;;  %p1937_p6 = por %p39_p4, %p38_p3 }
   0xc   : > { %p83_p7 = scmp.eq.s32.totalorder %s1915_s13, 1  ;;  %p89_p8 = scmp.eq.s32.totalorder %s1557_s14, 1 }
   0xd   : > { %s2782_s20 = scalar_select %p1937_p6, 1, 0 }
   0xe   : > { %p1733_p10 = scmp.lt.s32.totalorder %s1870_s12, 2  ;;  %p1944_p11 = por %p83_p7, %p32_p0 }
   0xf   : > { %p1948_p12 = por %p89_p8, %p38_p3  ;;  %s112_s23 = sand.u32 1, %s1866_s11  }
  0x10   : > { %s2783_s21 = scalar_select %p1944_p11, 1, 0 }
  0x11   : > { %s2784_s22 = scalar_select %p1948_p12, 1, 0 }
  0x12   : > { %s1589_s24 = sshll.u32 %s1870_s12, 11  ;;  %s1560_s25 = sshll.u32 %s112_s23, 7 }
  0x13   : > { %s1957_s28 = scalar_lea.hbm %s2764_s0, %s1589_s24  ;;  %s116_s29 = scalar_lea.vmem [#allocation2], %s1560_s25 }
  0x14   : > { %s124_s30 = sshll.u32 %s116_s29, 4  ;;  %p1961_p13 = pnand %p1733_p10, %p1933_p5  ;;  %s1965_s30 = int_to_ptr.vmem [resolvable:$true] %s124_s30 }
  0x15   : > { %s1967_s4 = scalar_lea.sflag [#allocation3], %s112_s23  ;;  %s1778_s5 = scalar_lea.hbm %s1957_s28, 2048 }
  0x16   : > { %p1779_p0 = scmp.ne.s32.totalorder %s1957_s28, %s1778_s5  ;;  %p1780_p1 = pneg %p1961_p13 }
  0x17   : > { %s1783_s8 = scalar_lea.hbm %s2764_s0, 4096  ;;  %p1784_p4 = scmp.lt.s32.totalorder %s1957_s28, %s2764_s0 }
  0x18   : > { %p1781_p2 = pnand %p1780_p1, %p1779_p0  ;;  %p1785_p5 = scmp.lt.s32.totalorder %s1783_s8, %s1778_s5 }
  0x1a   : > { %p1782_p3 = pneg %p1781_p2  ;;  %p1786_p7 = por %p1785_p5, %p1784_p4 }
  0x1c   : > { %p1787_p8 = pnand %p1786_p7, %p1782_p3 }
  0x1e   : > { %1790 = shalt.err (!%p1787_p8)
}
  0x1f   : > { %s1791_s17 = scalar_lea.vmem %s1965_s30, 2048  ;;  %s1872_s19 = smov [#allocation2]  }
  0x20   : > { %p1792_p10 = scmp.ne.s32.totalorder %s1965_s30, %s1791_s17  ;;  %s1796_s23 = sshll.u32 %s1872_s19, 4  ;;  %s1797_s23 = int_to_ptr.vmem [resolvable:$false] %s1796_s23 }
  0x21   : > { %s1798_s24 = scalar_lea.vmem %s1797_s23, 4096  ;;  %p1799_p2 = scmp.lt.s32.totalorder %s1965_s30, %s1797_s23 }
  0x22   : > { %p1794_p9 = pnand %p1792_p10, %p1780_p1  ;;  %p1800_p12 = scmp.lt.s32.totalorder %s1798_s24, %s1791_s17 }
  0x24   : > { %p1795_p0 = pneg %p1794_p9  ;;  %p1801_p11 = por %p1800_p12, %p1799_p2 }
  0x26   : > { %p1802_p6 = pnand %p1801_p11, %p1795_p0 }
  0x28   : > { %1805 = shalt.err (!%p1802_p6)
}
  0x29   : > { %s1873_s25 = smov 64   ;;  %s1874_s26 = smov 4  }
  0x2a   : > { %1728 = dma.hbm_to_vmem [thread:$0]  (!%p1961_p13), %s1957_s28, 2048, %s1965_s30, %s1967_s4, %s1873_s25, %s1873_s25, %s1874_s26  }
  0x2b   : > { %p1564_p9 = scmp.ge.s32.totalorder %s1870_s12, 1  ;;  %p132_p1 = scmp.lt.s32.totalorder %s1870_s12, 3 }
  0x2d   : > { %p133_p3 = pnand %p1564_p9, %p132_p1 }
  0x2f   : > { %136 = sbr.rel (%p133_p3) target bundleno = 1353 (0x549), region = 28 }
  0x34   : > { %s1991_s27 = sand.u32 1, %s1862_s10   ;;  %p2786_p6 = scmp.ne.s32.totalorder %s2782_s20, 0 }
  0x35   : > { %s1565_s29 = sshll.u32 %s1991_s27, 7  ;;  %s139_s5 = scalar_lea.sflag [#allocation3], %s1991_s27 }
  0x36   : > { %s1995_s6 = scalar_lea.vmem [#allocation2], %s1565_s29 }
  0x37   : > { %1849 = dma.done.wait (%p2786_p6), %s139_s5, 2048  }
  0x38   : > { %1851 = vsyncadd (%p2786_p6), %s139_s5, 4294965248  ;;  %v1655_v0 = vld [vmem:[%s1995_s6 + $0x10] sm:$0xff]   ;;  %vm228_vm0 = vcmask 400384   ;;  %v1591_v1 = vld [vmem:[%s1995_s6] sm:$0xff]   ;;  %vm401_vm1 = vcmask 130112   ;;  %vm408_vm2 = vcmask 195712  }
  0x39   : > { %v1600_v2 = vunpack.c.l.bf16 %v1655_v0  ;;  %v1592_v3 = vunpack.c.l.bf16 %v1591_v1  ;;  %v1601_v4 = vunpack.c.h.bf16 %v1655_v0  ;;  %v1593_v5 = vunpack.c.h.bf16 %v1591_v1  ;;  %v1656_v6 = vld [vmem:[%s1995_s6 + $0x18] sm:$0xff]   ;;  %v1654_v7 = vld [vmem:[%s1995_s6 + $0x8] sm:$0xff]   ;;  %v1657_v14 = vld [vmem:[%s1995_s6 + $0x20] sm:$0xff]   ;;  %s1566_s26 = sshll.u32 %s1991_s27, 3  ;;  %s1585_s29 = sshll.u32 %s1915_s13, 7 }
  0x3a   : > { %v1604_v12 = vunpack.c.l.bf16 %v1656_v6  ;;  %v1596_v13 = vunpack.c.l.bf16 %v1654_v7  ;;  %v1609_v17 = vunpack.c.h.bf16 %v1657_v14  ;;  %v1608_v18 = vunpack.c.l.bf16 %v1657_v14  ;;  %v1659_v23 = vld [vmem:[%s1995_s6 + $0x30] sm:$0xff]   ;;  %v1658_v24 = vld [vmem:[%s1995_s6 + $0x28] sm:$0xff]   ;;  %v1661_v33 = vld [vmem:[%s1995_s6 + $0x40] sm:$0xff]   ;;  %s162_s5 = scalar_lea.vmem [#allocation5], %s1566_s26  ;;  %s1485_s30 = scalar_lea.hbm %s2766_s2, %s1585_s29 }
  0x3b   : > { %v241_v8 = vsel %vm228_vm0, %v1600_v2, 0.0  ;;  %v229_v9 = vsel %vm228_vm0, %v1592_v3, 0.0  ;;  %v244_v10 = vsel %vm228_vm0, %v1601_v4, 0.0  ;;  %v232_v11 = vsel %vm228_vm0, %v1593_v5, 0.0  ;;  %v1660_v34 = vld [vmem:[%s1995_s6 + $0x38] sm:$0xff]   ;;  %v1663_v43 = vld [vmem:[%s1995_s6 + $0x50] sm:$0xff]  }
  0x3c   : > { %242 = vadd.xlane.f32.xlu1 %v241_v8  ;;  %230 = vadd.xlane.f32.xlu0 %v229_v9  ;;  %v247_v15 = vsel %vm228_vm0, %v1604_v12, 0.0  ;;  %v235_v16 = vsel %vm228_vm0, %v1596_v13, 0.0  ;;  %v256_v19 = vsel %vm228_vm0, %v1609_v17, 0.0  ;;  %v253_v20 = vsel %vm228_vm0, %v1608_v18, 0.0  ;;  %v1662_v44 = vld [vmem:[%s1995_s6 + $0x48] sm:$0xff]   ;;  %v1665_v53 = vld [vmem:[%s1995_s6 + $0x60] sm:$0xff]  }
  0x3d   : > { %v1605_v21 = vunpack.c.h.bf16 %v1656_v6  ;;  %v1597_v22 = vunpack.c.h.bf16 %v1654_v7  ;;  %v1616_v27 = vunpack.c.l.bf16 %v1659_v23  ;;  %v1612_v28 = vunpack.c.l.bf16 %v1658_v24  ;;  %v1664_v54 = vld [vmem:[%s1995_s6 + $0x58] sm:$0xff]   ;;  %v1667_v63 = vld [vmem:[%s1995_s6 + $0x70] sm:$0xff]   ;;  %v1666_v0 = vld [vmem:[%s1995_s6 + $0x68] sm:$0xff]   ;;  %s1474_s3 = scalar_lea.sflag [#allocation4], %s1991_s27  ;;  %p2803_p12 = scmp.ne.s32.totalorder %s2783_s21, 0 }
  0x3e   : > { %v1613_v31 = vunpack.c.h.bf16 %v1658_v24  ;;  %v1617_v32 = vunpack.c.h.bf16 %v1659_v23  ;;  %v1624_v37 = vunpack.c.l.bf16 %v1661_v33  ;;  %v1620_v38 = vunpack.c.l.bf16 %v1660_v34  ;;  %v1668_v9 = vld [vmem:[%s1995_s6 + $0x78] sm:$0xff]   ;;  %s1487_s6 = sshll.u32 %s162_s5, 4  ;;  %s1878_s7 = smov [#allocation5]   ;;  %s1488_s6 = int_to_ptr.vmem [resolvable:$true] %s1487_s6 }
  0x3f   : > { %v250_v25 = vsel %vm228_vm0, %v1605_v21, 0.0  ;;  %v238_v26 = vsel %vm228_vm0, %v1597_v22, 0.0  ;;  %v265_v29 = vsel %vm228_vm0, %v1616_v27, 0.0  ;;  %v259_v30 = vsel %vm228_vm0, %v1612_v28, 0.0  ;;  %s1806_s4 = scalar_lea.vmem %s1488_s6, 128  ;;  %s1810_s8 = sshll.u32 %s1878_s7, 4  ;;  %s1811_s8 = int_to_ptr.vmem [resolvable:$false] %s1810_s8 }
  0x40   : > { %245 = vadd.xlane.f32.xlu1 %v244_v10  ;;  %233 = vadd.xlane.f32.xlu0 %v232_v11  ;;  %v262_v35 = vsel %vm228_vm0, %v1613_v31, 0.0  ;;  %v268_v36 = vsel %vm228_vm0, %v1617_v32, 0.0  ;;  %v277_v39 = vsel %vm228_vm0, %v1624_v37, 0.0  ;;  %v271_v40 = vsel %vm228_vm0, %v1620_v38, 0.0  ;;  %p1807_p11 = scmp.ne.s32.totalorder %s1488_s6, %s1806_s4  ;;  %s1812_s13 = scalar_lea.vmem %s1811_s8, 256 }
  0x41   : > { %v1621_v41 = vunpack.c.h.bf16 %v1660_v34  ;;  %v1625_v42 = vunpack.c.h.bf16 %v1661_v33  ;;  %v1632_v47 = vunpack.c.l.bf16 %v1663_v43  ;;  %v1628_v48 = vunpack.c.l.bf16 %v1662_v44  ;;  %p1813_p5 = scmp.lt.s32.totalorder %s1488_s6, %s1811_s8  ;;  %p1814_p7 = scmp.lt.s32.totalorder %s1812_s13, %s1806_s4 }
  0x42   : > { %v1629_v51 = vunpack.c.h.bf16 %v1662_v44  ;;  %v1633_v52 = vunpack.c.h.bf16 %v1663_v43  ;;  %v1640_v57 = vunpack.c.l.bf16 %v1665_v53  ;;  %v1636_v58 = vunpack.c.l.bf16 %v1664_v54  ;;  %p1808_p13 = pnand %p1807_p11, %p2803_p12 }
  0x43   : > { %v274_v45 = vsel %vm228_vm0, %v1621_v41, 0.0  ;;  %v280_v46 = vsel %vm228_vm0, %v1625_v42, 0.0  ;;  %v289_v49 = vsel %vm228_vm0, %v1632_v47, 0.0  ;;  %v283_v50 = vsel %vm228_vm0, %v1628_v48, 0.0  ;;  %p1815_p8 = por %p1814_p7, %p1813_p5 }
  0x44   : > { %248 = vadd.xlane.f32.xlu1 %v247_v15  ;;  %236 = vadd.xlane.f32.xlu0 %v235_v16  ;;  %v286_v55 = vsel %vm228_vm0, %v1629_v51, 0.0  ;;  %v292_v56 = vsel %vm228_vm0, %v1633_v52, 0.0  ;;  %v301_v59 = vsel %vm228_vm0, %v1640_v57, 0.0  ;;  %v295_v60 = vsel %vm228_vm0, %v1636_v58, 0.0  ;;  %p1809_p4 = pneg %p1808_p13 }
  0x45   : > { %v1637_v61 = vunpack.c.h.bf16 %v1664_v54  ;;  %v1641_v62 = vunpack.c.h.bf16 %v1665_v53  ;;  %v1648_v3 = vunpack.c.l.bf16 %v1667_v63  ;;  %v1644_v4 = vunpack.c.l.bf16 %v1666_v0 }
  0x46   : > { %v1645_v7 = vunpack.c.h.bf16 %v1666_v0  ;;  %v1649_v8 = vunpack.c.h.bf16 %v1667_v63  ;;  %v1652_v12 = vunpack.c.l.bf16 %v1668_v9  ;;  %v1653_v13 = vunpack.c.h.bf16 %v1668_v9  ;;  %p1816_p10 = pnand %p1815_p8, %p1809_p4 }
  0x47   : > { %v298_v1 = vsel %vm228_vm0, %v1637_v61, 0.0  ;;  %v304_v2 = vsel %vm228_vm0, %v1641_v62, 0.0  ;;  %v313_v5 = vsel %vm228_vm0, %v1648_v3, 0.0  ;;  %v307_v6 = vsel %vm228_vm0, %v1644_v4, 0.0 }
  0x48   : > { %257 = vadd.xlane.f32.xlu1 %v256_v19  ;;  %254 = vadd.xlane.f32.xlu0 %v253_v20  ;;  %v310_v10 = vsel %vm228_vm0, %v1645_v7, 0.0  ;;  %v316_v11 = vsel %vm228_vm0, %v1649_v8, 0.0  ;;  %v319_v14 = vsel %vm228_vm0, %v1652_v12, 0.0  ;;  %v322_v15 = vsel %vm228_vm0, %v1653_v13, 0.0 }
  0x49   : > { %vm415_vm3 = vcmask 261312   ;;  %vm550_vm4 = vcmask 1041409   ;;  %vm552_vm5 = vcmask 1042434   ;;  %vm554_vm6 = vcmask 1043459  }
  0x4a   : > { %vm556_vm7 = vcmask 1044484   ;;  %vm558_vm8 = vcmask 1045509   ;;  %vm560_vm9 = vcmask 1046534   ;;  %vm562_vm10 = vcmask 1047559  }
  0x4b   : > { %vm565_vm11 = vcmask 261120   ;;  %vm1877_vm12 = vmmov 0  }
  0x4c   : > { %251 = vadd.xlane.f32.xlu1 %v250_v25  ;;  %239 = vadd.xlane.f32.xlu0 %v238_v26 }
  0x50   : > { %266 = vadd.xlane.f32.xlu1 %v265_v29  ;;  %260 = vadd.xlane.f32.xlu0 %v259_v30  ;;  %v390_v30 = vlaneseq }
  0x52   : > { %v391_v33 = vand.u32 127, %v390_v30  ;;  %v2051_v34 = vshrl.u32 %v390_v30, 7 }
  0x54   : > { %263 = vadd.xlane.f32.xlu1 %v262_v35  ;;  %269 = vadd.xlane.f32.xlu0 %v268_v36  ;;  %v396_v37 = vadd.s32 4294967288, %v391_v33  ;;  %v403_v38 = vadd.s32 4294967280, %v391_v33 }
  0x56   : > { %v2061_v44 = vsub.s32 %v396_v37, %v2051_v34  ;;  %v2068_v47 = vsub.s32 %v403_v38, %v2051_v34 }
  0x58   : > { %278 = vadd.xlane.f32.xlu1 %v277_v39  ;;  %272 = vadd.xlane.f32.xlu0 %v271_v40  ;;  %v410_v39 = vadd.s32 4294967272, %v391_v33  ;;  %v2054_v40 = vsub.s32 %v391_v33, %v2051_v34 }
  0x5a   : > { %v2077_v51 = vsub.s32 %v410_v39, %v2051_v34 }
  0x5c   : > { %275 = vadd.xlane.f32.xlu1 %v274_v45  ;;  %281 = vadd.xlane.f32.xlu0 %v280_v46 }
  0x60   : > { %290 = vadd.xlane.f32.xlu1 %v289_v49  ;;  %284 = vadd.xlane.f32.xlu0 %v283_v50 }
  0x64   : > { %287 = vadd.xlane.f32.xlu1 %v286_v55  ;;  %293 = vadd.xlane.f32.xlu0 %v292_v56 }
  0x68   : > { %302 = vadd.xlane.f32.xlu1 %v301_v59  ;;  %296 = vadd.xlane.f32.xlu0 %v295_v60 }
  0x6c   : > { %299 = vadd.xlane.f32.xlu1 %v298_v1  ;;  %305 = vadd.xlane.f32.xlu0 %v304_v2 }
  0x70   : > { %314 = vadd.xlane.f32.xlu1 %v313_v5  ;;  %308 = vadd.xlane.f32.xlu0 %v307_v6 }
  0x74   : > { %311 = vadd.xlane.f32.xlu1 %v310_v10  ;;  %317 = vadd.xlane.f32.xlu0 %v316_v11 }
  0x78   : > { %320 = vadd.xlane.f32.xlu0 %v319_v14  ;;  %323 = vadd.xlane.f32.xlu1 %v322_v15 }
  0xc5   : > { %v243_v16 = vpop.xlane.xlu1 %242  ;;  %v231_v17 = vpop.xlane.xlu0 %230 }
  0xc6   : > { %v2058_v43 = vmul.f32 0.020408163, %v243_v16  ;;  %v2074_v50 = vmul.f32 0.020408163, %v231_v17 }
  0xc8   : > { %v420_v56 = vrot.slane %v2058_v43, %v2054_v40  ;;  %v395_v63 = vrot.slane %v2074_v50, %v2054_v40 }
  0xc9   : > { %v246_v18 = vpop.xlane.xlu1 %245  ;;  %v234_v19 = vpop.xlane.xlu0 %233 }
  0xca   : > { %v2063_v45 = vmul.f32 0.020408163, %v246_v18  ;;  %v2065_v46 = vmul.f32 0.020408163, %v234_v19 }
  0xcc   : > { %v424_v57 = vrot.slane %v2063_v45, %v2061_v44  ;;  %v400_v58 = vrot.slane %v2065_v46, %v2061_v44 }
  0xcd   : > { %v249_v20 = vpop.xlane.xlu1 %248  ;;  %v237_v21 = vpop.xlane.xlu0 %236 }
  0xce   : > { %v2070_v48 = vmul.f32 0.020408163, %v249_v20  ;;  %v2072_v49 = vmul.f32 0.020408163, %v237_v21  ;;  %v425_v5 = vsel %vm401_vm1, %v424_v57, %v420_v56  ;;  %v402_v6 = vsel %vm401_vm1, %v400_v58, %v395_v63 }
  0xd0   : > { %v429_v59 = vrot.slane %v2070_v48, %v2068_v47  ;;  %v407_v60 = vrot.slane %v2072_v49, %v2068_v47 }
  0xd1   : > { %v258_v22 = vpop.xlane.xlu1 %257  ;;  %v255_v23 = vpop.xlane.xlu0 %254 }
  0xd2   : > { %v2093_v61 = vmul.f32 0.020408163, %v258_v22  ;;  %v2095_v62 = vmul.f32 0.020408163, %v255_v23  ;;  %v430_v8 = vsel %vm408_vm2, %v429_v59, %v425_v5  ;;  %v409_v9 = vsel %vm408_vm2, %v407_v60, %v402_v6 }
  0xd4   : > { %v443_v10 = vrot.slane %v2093_v61, %v2061_v44  ;;  %v439_v11 = vrot.slane %v2095_v62, %v2054_v40 }
  0xd5   : > { %v252_v24 = vpop.xlane.xlu1 %251  ;;  %v240_v25 = vpop.xlane.xlu0 %239 }
  0xd6   : > { %v2079_v52 = vmul.f32 0.020408163, %v252_v24  ;;  %v2081_v53 = vmul.f32 0.020408163, %v240_v25  ;;  %v444_v21 = vsel %vm401_vm1, %v443_v10, %v439_v11 }
  0xd8   : > { %v434_v0 = vrot.slane %v2079_v52, %v2077_v51  ;;  %v414_v1 = vrot.slane %v2081_v53, %v2077_v51 }
  0xd9   : > { %v267_v26 = vpop.xlane.xlu1 %266  ;;  %v261_v27 = vpop.xlane.xlu0 %260 }
  0xda   : > { %v2103_v2 = vmul.f32 0.020408163, %v261_v27  ;;  %v435_v12 = vsel %vm415_vm3, %v434_v0, %v430_v8  ;;  %v416_v13 = vsel %vm415_vm3, %v414_v1, %v409_v9  ;;  %v2123_v19 = vmul.f32 0.020408163, %v267_v26 }
  0xdb   : > { %v551_v22 = vsel %vm550_vm4, %v435_v12, %v416_v13 }
  0xdc   : > { %v448_v14 = vrot.slane %v2103_v2, %v2068_v47  ;;  %v458_v37 = vrot.slane %v2123_v19, %v2054_v40 }
  0xdd   : > { %v264_v28 = vpop.xlane.xlu1 %263  ;;  %v270_v29 = vpop.xlane.xlu0 %269 }
  0xde   : > { %v2107_v7 = vmul.f32 0.020408163, %v264_v28  ;;  %v2119_v15 = vmul.f32 0.020408163, %v270_v29  ;;  %v449_v24 = vsel %vm408_vm2, %v448_v14, %v444_v21 }
  0xe0   : > { %v453_v20 = vrot.slane %v2107_v7, %v2077_v51  ;;  %v462_v25 = vrot.slane %v2119_v15, %v2061_v44 }
  0xe1   : > { %v279_v31 = vpop.xlane.xlu1 %278  ;;  %v2049_v32 = vpop.xlane.xlu0 %272 }
  0xe2   : > { %v2129_v23 = vmul.f32 0.020408163, %v279_v31  ;;  %v2135_v27 = vmul.f32 0.020408163, %v2049_v32  ;;  %v454_v32 = vsel %vm415_vm3, %v453_v20, %v449_v24  ;;  %v463_v56 = vsel %vm401_vm1, %v462_v25, %v458_v37 }
  0xe4   : > { %v467_v57 = vrot.slane %v2135_v27, %v2068_v47 }
  0xe5   : > { %v276_v35 = vpop.xlane.xlu1 %275  ;;  %v282_v36 = vpop.xlane.xlu0 %281 }
  0xe6   : > { %v2121_v16 = vmul.f32 0.020408163, %v282_v36  ;;  %v2139_v28 = vmul.f32 0.020408163, %v276_v35  ;;  %v477_v35 = vrot.slane %v2129_v23, %v2054_v40  ;;  %v468_v13 = vsel %vm408_vm2, %v467_v57, %v463_v56 }
  0xe7   : > { %v553_v57 = vsel %vm552_vm5, %v454_v32, %v551_v22 }
  0xe8   : > { %v481_v29 = vrot.slane %v2121_v16, %v2061_v44 }
  0xe9   : > { %v2056_v41 = vpop.xlane.xlu1 %290  ;;  %v285_v42 = vpop.xlane.xlu0 %284 }
  0xea   : > { %v2137_v26 = vmul.f32 0.020408163, %v285_v42  ;;  %v2157_v42 = vmul.f32 0.020408163, %v2056_v41  ;;  %v472_v41 = vrot.slane %v2139_v28, %v2077_v51  ;;  %v482_v60 = vsel %vm401_vm1, %v481_v29, %v477_v35 }
  0xec   : > { %v486_v58 = vrot.slane %v2137_v26, %v2068_v47  ;;  %v496_v9 = vrot.slane %v2157_v42, %v2054_v40  ;;  %v473_v20 = vsel %vm415_vm3, %v472_v41, %v468_v13 }
  0xed   : > { %v288_v54 = vpop.xlane.xlu1 %287  ;;  %v294_v55 = vpop.xlane.xlu0 %293 }
  0xee   : > { %v2143_v30 = vmul.f32 0.020408163, %v288_v54  ;;  %v2145_v31 = vmul.f32 0.020408163, %v294_v55  ;;  %v487_v14 = vsel %vm408_vm2, %v486_v58, %v482_v60 }
  0xf0   : > { %v491_v63 = vrot.slane %v2143_v30, %v2077_v51  ;;  %v500_v0 = vrot.slane %v2145_v31, %v2061_v44 }
  0xf1   : > { %v303_v3 = vpop.xlane.xlu1 %302  ;;  %v297_v4 = vpop.xlane.xlu0 %296 }
  0xf2   : > { %v2150_v38 = vmul.f32 0.020408163, %v297_v4  ;;  %v2168_v59 = vmul.f32 0.020408163, %v303_v3  ;;  %v492_v21 = vsel %vm415_vm3, %v491_v63, %v487_v14  ;;  %v501_v24 = vsel %vm401_vm1, %v500_v0, %v496_v9 }
  0xf3   : > { %v1875_v14 = vmov 0  }
  0xf4   : > { %v505_v5 = vrot.slane %v2150_v38, %v2068_v47  ;;  %1773 = vset.pattern.permute.xlu0 %v1875_v14  ;;  %1772 = vset.pattern.permute.xlu1 %v1875_v14 }
  0xf5   : > { %v300_v17 = vpop.xlane.xlu1 %299  ;;  %v306_v18 = vpop.xlane.xlu0 %305 }
  0xf6   : > { %v2152_v39 = vmul.f32 0.020408163, %v306_v18  ;;  %v2159_v54 = vmul.f32 0.020408163, %v300_v17  ;;  %v515_v17 = vrot.slane %v2168_v59, %v2054_v40 }
  0xf8   : > { %v519_v3 = vrot.slane %v2152_v39, %v2061_v44  ;;  %v510_v10 = vrot.slane %v2159_v54, %v2077_v51 }
  0xf9   : > { %v315_v33 = vpop.xlane.xlu1 %314  ;;  %v309_v36 = vpop.xlane.xlu0 %308 }
  0xfa   : > { %v2161_v55 = vmul.f32 0.020408163, %v309_v36  ;;  %v2189_v11 = vmul.f32 0.020408163, %v315_v33  ;;  %v506_v36 = vsel %vm408_vm2, %v505_v5, %v501_v24  ;;  %v520_v37 = vsel %vm401_vm1, %v519_v3, %v515_v17 }
  0xfb   : > { %v511_v58 = vsel %vm415_vm3, %v510_v10, %v506_v36  ;;  %v2776_v17 = vsub.s32 0, %v2051_v34 }
  0xfc   : > { %v524_v12 = vrot.slane %v2161_v55, %v2068_v47  ;;  %v534_v41 = vrot.slane %v2189_v11, %v2054_v40 }
  0xfd   : > { %v312_v1 = vpop.xlane.xlu1 %311  ;;  %v318_v4 = vpop.xlane.xlu0 %317 }
  0xfe   : > { %v2181_v6 = vmul.f32 0.020408163, %v312_v1  ;;  %v2183_v8 = vmul.f32 0.020408163, %v318_v4  ;;  %v525_v60 = vsel %vm408_vm2, %v524_v12, %v520_v37  ;;  %v555_v4 = vsel %vm554_vm6, %v473_v20, %v553_v57 }
  0xff   : > { %v557_v22 = vsel %vm556_vm7, %v492_v21, %v555_v4  ;;  %v2773_v20 = vsub.s32 1, %v2051_v34 }
 0x100   : > { %v529_v18 = vrot.slane %v2181_v6, %v2077_v51  ;;  %v538_v25 = vrot.slane %v2183_v8, %v2061_v44  ;;  %v559_v3 = vsel %vm558_vm8, %v511_v58, %v557_v22 }
 0x101   : > { %v321_v29 = vpop.xlane.xlu0 %320  ;;  %v324_v33 = vpop.xlane.xlu1 %323 }
 0x102   : > { %v2206_v35 = vmul.f32 0.020408163, %v321_v29  ;;  %v2208_v56 = vmul.f32 0.020408163, %v324_v33  ;;  %v530_v1 = vsel %vm415_vm3, %v529_v18, %v525_v60  ;;  %v539_v5 = vsel %vm401_vm1, %v538_v25, %v534_v41 }
 0x103   : > { %v561_v10 = vsel %vm560_vm9, %v530_v1, %v559_v3  ;;  %v2770_v18 = vsub.s32 2, %v2051_v34  ;;  %v2775_v25 = vsub.s32 3, %v2051_v34 }
 0x104   : > { %v543_v63 = vrot.slane %v2206_v35, %v2068_v47  ;;  %v548_v0 = vrot.slane %v2208_v56, %v2077_v51 }
 0x106   : > { %v544_v32 = vsel %vm408_vm2, %v543_v63, %v539_v5 }
 0x107   : > { %v549_v9 = vsel %vm415_vm3, %v548_v0, %v544_v32  ;;  %v2772_v32 = vsub.s32 5, %v2051_v34 }
 0x108   : > { %v563_v12 = vsel %vm562_vm10, %v549_v9, %v561_v10 }
 0x109   : > { %v566_v13 = vsel %vm565_vm11, %v563_v12, 0.0 }
 0x10a   : > { %567 = vadd.xlane.f32.xlu0 %v566_v13 }
 0x193   : > { %v568_v21 = vpop.xlane.xlu0 %567 }
 0x194   : > { %v2232_v24 = vmul.f32 0.03125, %v568_v21 }
 0x196   : > { %v575_v29 = vrot.slane %v2232_v24, %v2776_v17  ;;  %v2241_v33 = vrot.slane %v2232_v24, %v2770_v18  ;;  %v579_v36 = vrot.slane %v2232_v24, %v2773_v20  ;;  %v2255_v58 = vrot.slane %v2232_v24, %v2775_v25 }
 0x198   : > { %v2247_v37 = vsub.f32 %v2065_v46, %v575_v29  ;;  %v2250_v57 = vsub.f32 %v2074_v50, %v575_v29  ;;  %v2263_v63 = vsub.f32 %v2103_v2, %v2241_v33  ;;  %v2266_v46 = vsub.f32 %v2058_v43, %v579_v36 }
 0x199   : > { %v2774_v50 = vsub.s32 4, %v2051_v34  ;;  %v2275_v4 = vsub.f32 %v2119_v15, %v2255_v58  ;;  %v2278_v2 = vsub.f32 %v2063_v45, %v579_v36  ;;  %v2291_v15 = vsub.f32 %v2135_v27, %v2255_v58 }
 0x19a   : > { %v645_v41 = vmul.f32 %v2247_v37, %v2247_v37  ;;  %v644_v60 = vmul.f32 %v2250_v57, %v2250_v57  ;;  %v654_v0 = vmul.f32 %v2263_v63, %v2263_v63  ;;  %v648_v1 = vmul.f32 %v2266_v46, %v2266_v46 }
 0x19b   : > { %v2283_v43 = vrot.slane %v2232_v24, %v2774_v50  ;;  %v657_v5 = vmul.f32 %v2275_v4, %v2275_v4  ;;  %v649_v22 = vmul.f32 %v2278_v2, %v2278_v2  ;;  %v2294_v45 = vsub.f32 %v2072_v49, %v575_v29 }
 0x19c   : > { %712 = vperm.xlu0 %1773, %v645_v41   ;;  %709 = vperm.xlu1 %1772, %v644_v60   ;;  %v658_v3 = vmul.f32 %v2291_v15, %v2291_v15  ;;  %v2306_v27 = vsub.f32 %v2070_v48, %v579_v36  ;;  %v595_v49 = vrot.slane %v2232_v24, %v2772_v32 }
 0x19d   : > { %v646_v9 = vmul.f32 %v2294_v45, %v2294_v45  ;;  %v2303_v10 = vsub.f32 %v2121_v16, %v2283_v43  ;;  %v2317_v14 = vsub.f32 %v2137_v26, %v2283_v43  ;;  %v2321_v48 = vsub.f32 %v2095_v62, %v2241_v33 }
 0x19e   : > { %v650_v13 = vmul.f32 %v2306_v27, %v2306_v27  ;;  %v2771_v16 = vsub.s32 6, %v2051_v34  ;;  %v2329_v60 = vsub.f32 %v2145_v31, %v595_v49  ;;  %v2333_v26 = vsub.f32 %v2093_v61, %v2241_v33 }
 0x19f   : > { %v661_v12 = vmul.f32 %v2303_v10, %v2303_v10  ;;  %v662_v21 = vmul.f32 %v2317_v14, %v2317_v14  ;;  %v652_v41 = vmul.f32 %v2321_v48, %v2321_v48  ;;  %v2346_v31 = vsub.f32 %v2081_v53, %v575_v29 }
 0x1a0   : > { %739 = vperm.xlu0 %1773, %v654_v0   ;;  %721 = vperm.xlu1 %1772, %v648_v1   ;;  %v599_v62 = vrot.slane %v2232_v24, %v2771_v16  ;;  %v665_v0 = vmul.f32 %v2329_v60, %v2329_v60  ;;  %v653_v1 = vmul.f32 %v2333_v26, %v2333_v26  ;;  %v2769_v61 = vsub.s32 7, %v2051_v34 }
 0x1a2   : > { %v603_v53 = vrot.slane %v2232_v24, %v2769_v61 }
 0x1a4   : > { %748 = vperm.xlu0 %1773, %v657_v5   ;;  %724 = vperm.xlu1 %1772, %v649_v22   ;;  %v2343_v5 = vsub.f32 %v2150_v38, %v595_v49 }
 0x1a6   : > { %v666_v22 = vmul.f32 %v2343_v5, %v2343_v5 }
 0x1a8   : > { %751 = vperm.xlu0 %1773, %v658_v3   ;;  %715 = vperm.xlu1 %1772, %v646_v9   ;;  %v647_v3 = vmul.f32 %v2346_v31, %v2346_v31  ;;  %v2354_v9 = vsub.f32 %v2152_v39, %v599_v62  ;;  %v2371_v39 = vsub.f32 %v2123_v19, %v2255_v58 }
 0x1aa   : > { %v669_v38 = vmul.f32 %v2354_v9, %v2354_v9  ;;  %v656_v24 = vmul.f32 %v2371_v39, %v2371_v39 }
 0x1ac   : > { %760 = vperm.xlu0 %1773, %v661_v12   ;;  %727 = vperm.xlu1 %1772, %v650_v13   ;;  %v2357_v12 = vsub.f32 %v2079_v52, %v579_v36  ;;  %v2367_v13 = vsub.f32 %v2161_v55, %v599_v62  ;;  %v2378_v36 = vsub.f32 %v2183_v8, %v603_v53 }
 0x1ae   : > { %v651_v29 = vmul.f32 %v2357_v12, %v2357_v12  ;;  %v670_v52 = vmul.f32 %v2367_v13, %v2367_v13  ;;  %v673_v19 = vmul.f32 %v2378_v36, %v2378_v36 }
 0x1b0   : > { %763 = vperm.xlu0 %1773, %v662_v21   ;;  %733 = vperm.xlu1 %1772, %v652_v41   ;;  %v2382_v21 = vsub.f32 %v2107_v7, %v2241_v33  ;;  %v2389_v41 = vsub.f32 %v2206_v35, %v603_v53  ;;  %v2401_v33 = vsub.f32 %v2139_v28, %v2255_v58 }
 0x1b1   : > { %v2417_v58 = vsub.f32 %v2168_v59, %v599_v62  ;;  %v2432_v59 = vsub.f32 %v2181_v6, %v599_v62 }
 0x1b2   : > { %v655_v55 = vmul.f32 %v2382_v21, %v2382_v21  ;;  %v674_v7 = vmul.f32 %v2389_v41, %v2389_v41  ;;  %v659_v35 = vmul.f32 %v2401_v33, %v2401_v33 }
 0x1b3   : > { %2789 = vst [vmem:[#allocation10_spill] sm:$0xff] %v2432_v59 }
 0x1b4   : > { %772 = vperm.xlu0 %1773, %v665_v0   ;;  %736 = vperm.xlu1 %1772, %v653_v1   ;;  %v2393_v0 = vsub.f32 %v2129_v23, %v2283_v43  ;;  %v2406_v23 = vsub.f32 %v2157_v42, %v595_v49  ;;  %v668_v42 = vmul.f32 %v2417_v58, %v2417_v58 }
 0x1b6   : > { %v660_v8 = vmul.f32 %v2393_v0, %v2393_v0  ;;  %v664_v1 = vmul.f32 %v2406_v23, %v2406_v23 }
 0x1b8   : > { %775 = vperm.xlu0 %1773, %v666_v22   ;;  %718 = vperm.xlu1 %1772, %v647_v3   ;;  %v2412_v22 = vsub.f32 %v2143_v30, %v2283_v43  ;;  %v2422_v3 = vsub.f32 %v2159_v54, %v595_v49  ;;  %v2427_v30 = vsub.f32 %v2189_v11, %v603_v53 }
 0x1b9   : > { %v2437_v54 = vsub.f32 %v2208_v56, %v603_v53 }
 0x1ba   : > { %v663_v28 = vmul.f32 %v2412_v22, %v2412_v22  ;;  %2787 = vst [vmem:[#allocation8_spill] sm:$0xff] %v2422_v3  ;;  %2788 = vst [vmem:[#allocation9_spill] sm:$0xff] %v2427_v30  ;;  %v672_v43 = vmul.f32 %v2427_v30, %v2427_v30 }
 0x1bb   : > { %2790 = vst [vmem:[#allocation11_spill] sm:$0xff] %v2437_v54  ;;  %v675_v49 = vmul.f32 %v2437_v54, %v2437_v54 }
 0x1bc   : > { %784 = vperm.xlu0 %1773, %v669_v38   ;;  %730 = vperm.xlu1 %1772, %v651_v29   ;;  %v667_v38 = vmul.f32 %v2422_v3, %v2422_v3  ;;  %v671_v29 = vmul.f32 %v2432_v59, %v2432_v59 }
 0x1c0   : > { %787 = vperm.xlu0 %1773, %v670_v52   ;;  %745 = vperm.xlu1 %1772, %v656_v24  }
 0x1c4   : > { %796 = vperm.xlu0 %1773, %v673_v19   ;;  %742 = vperm.xlu1 %1772, %v655_v55  }
 0x1c8   : > { %799 = vperm.xlu0 %1773, %v674_v7   ;;  %757 = vperm.xlu1 %1772, %v660_v8  }
 0x1cc   : > { %754 = vperm.xlu1 %1772, %v659_v35  }
 0x1d0   : > { %769 = vperm.xlu1 %1772, %v664_v1  }
 0x1d4   : > { %766 = vperm.xlu1 %1772, %v663_v28  }
 0x1d8   : > { %781 = vperm.xlu1 %1772, %v668_v42  }
 0x1dc   : > { %778 = vperm.xlu1 %1772, %v667_v38  }
 0x1e0   : > { %793 = vperm.xlu1 %1772, %v672_v43  }
 0x1e4   : > { %790 = vperm.xlu1 %1772, %v671_v29  }
 0x1e8   : > { %802 = vperm.xlu1 %1772, %v675_v49  }
 0x217   : > { %v710_v11 = vpop.permute.xlu1 %709  ;;  %v713_v24 = vpop.permute.xlu0 %712 }
 0x218   : > { %v811_v56 = vrot.slane %v713_v24, %v2061_v44  ;;  %v807_v53 = vrot.slane %v710_v11, %v2054_v40 }
 0x21a   : > { %v812_v16 = vsel %vm401_vm1, %v811_v56, %v807_v53 }
 0x21b   : > { %v722_v52 = vpop.permute.xlu1 %721  ;;  %v740_v7 = vpop.permute.xlu0 %739 }
 0x21c   : > { %v826_v29 = vrot.slane %v722_v52, %v2054_v40 }
 0x21f   : > { %v725_v19 = vpop.permute.xlu1 %724  ;;  %v749_v62 = vpop.permute.xlu0 %748 }
 0x220   : > { %v830_v42 = vrot.slane %v725_v19, %v2061_v44 }
 0x222   : > { %v831_v32 = vsel %vm401_vm1, %v830_v42, %v826_v29 }
 0x223   : > { %v716_v55 = vpop.permute.xlu1 %715  ;;  %v752_v1 = vpop.permute.xlu0 %751 }
 0x224   : > { %v816_v38 = vrot.slane %v716_v55, %v2068_v47  ;;  %v873_v30 = vrot.slane %v752_v1, %v2068_v47 }
 0x226   : > { %v817_v11 = vsel %vm408_vm2, %v816_v38, %v812_v16 }
 0x227   : > { %v728_v6 = vpop.permute.xlu1 %727  ;;  %v761_v49 = vpop.permute.xlu0 %760 }
 0x228   : > { %v835_v43 = vrot.slane %v728_v6, %v2068_v47 }
 0x22a   : > { %v836_v19 = vsel %vm408_vm2, %v835_v43, %v831_v32 }
 0x22b   : > { %v734_v8 = vpop.permute.xlu1 %733  ;;  %v764_v50 = vpop.permute.xlu0 %763 }
 0x22f   : > { %v737_v35 = vpop.permute.xlu1 %736  ;;  %v773_v25 = vpop.permute.xlu0 %772 }
 0x230   : > { %v849_v32 = vrot.slane %v737_v35, %v2061_v44  ;;  %v887_v35 = vrot.slane %v761_v49, %v2061_v44 }
 0x233   : > { %v719_v28 = vpop.permute.xlu1 %718  ;;  %v776_v53 = vpop.permute.xlu0 %775 }
 0x234   : > { %v821_v61 = vrot.slane %v719_v28, %v2077_v51 }
 0x236   : > { %v822_v55 = vsel %vm415_vm3, %v821_v61, %v817_v11  ;;  %v845_v61 = vrot.slane %v734_v8, %v2054_v40  ;;  %v854_v11 = vrot.slane %v740_v7, %v2068_v47  ;;  %v906_v7 = vrot.slane %v773_v25, %v2061_v44 }
 0x237   : > { %v731_v18 = vpop.permute.xlu1 %730  ;;  %v785_v29 = vpop.permute.xlu0 %784 }
 0x238   : > { %v840_v24 = vrot.slane %v731_v18, %v2077_v51 }
 0x23a   : > { %v841_v6 = vsel %vm415_vm3, %v840_v24, %v836_v19  ;;  %v868_v19 = vrot.slane %v749_v62, %v2061_v44 }
 0x23b   : > { %v956_v52 = vsel %vm550_vm4, %v841_v6, %v822_v55  ;;  %v746_v20 = vpop.permute.xlu1 %745  ;;  %v788_v16 = vpop.permute.xlu0 %787  ;;  %v850_v55 = vsel %vm401_vm1, %v849_v32, %v845_v61  ;;  %v925_v61 = vrot.slane %v785_v29, %v2061_v44 }
 0x23c   : > { %v864_v43 = vrot.slane %v746_v20, %v2054_v40 }
 0x23e   : > { %v869_v62 = vsel %vm401_vm1, %v868_v19, %v864_v43  ;;  %v930_v43 = vrot.slane %v788_v16, %v2068_v47 }
 0x23f   : > { %v743_v28 = vpop.permute.xlu1 %742  ;;  %v797_v6 = vpop.permute.xlu0 %796  ;;  %v874_v29 = vsel %vm408_vm2, %v873_v30, %v869_v62 }
 0x240   : > { %v859_v3 = vrot.slane %v743_v28, %v2077_v51  ;;  %v911_v28 = vrot.slane %v776_v53, %v2068_v47 }
 0x243   : > { %v758_v17 = vpop.permute.xlu1 %757 }
 0x244   : > { %v883_v24 = vrot.slane %v758_v17, %v2054_v40  ;;  %v892_v17 = vrot.slane %v764_v50, %v2068_v47 }
 0x246   : > { %v888_v1 = vsel %vm401_vm1, %v887_v35, %v883_v24  ;;  %v944_v24 = vrot.slane %v797_v6, %v2061_v44 }
 0x247   : > { %v755_v56 = vpop.permute.xlu1 %754 }
 0x248   : > { %v878_v32 = vrot.slane %v755_v56, %v2077_v51 }
 0x24a   : > { %v879_v53 = vsel %vm415_vm3, %v878_v32, %v874_v29 }
 0x24b   : > { %v770_v42 = vpop.permute.xlu1 %769 }
 0x24c   : > { %v902_v59 = vrot.slane %v770_v42, %v2054_v40  ;;  %v855_v42 = vsel %vm408_vm2, %v854_v11, %v850_v55 }
 0x24d   : > { %v860_v56 = vsel %vm415_vm3, %v859_v3, %v855_v42 }
 0x24e   : > { %v957_v3 = vsel %vm552_vm5, %v860_v56, %v956_v52  ;;  %v2791_v56 = vsub.s32 0, %v2051_v34 }
 0x24f   : > { %v767_v18 = vpop.permute.xlu1 %766 }
 0x250   : > { %v897_v49 = vrot.slane %v767_v18, %v2077_v51  ;;  %v800_v18 = vpop.permute.xlu0 %799 }
 0x251   : > { %v949_v6 = vrot.slane %v800_v18, %v2068_v47 }
 0x253   : > { %v782_v54 = vpop.permute.xlu1 %781 }
 0x254   : > { %v921_v8 = vrot.slane %v782_v54, %v2054_v40  ;;  %v907_v54 = vsel %vm401_vm1, %v906_v7, %v902_v59  ;;  %v893_v59 = vsel %vm408_vm2, %v892_v17, %v888_v1 }
 0x255   : > { %v898_v55 = vsel %vm415_vm3, %v897_v49, %v893_v59  ;;  %v912_v16 = vsel %vm408_vm2, %v911_v28, %v907_v54 }
 0x256   : > { %v926_v11 = vsel %vm401_vm1, %v925_v61, %v921_v8 }
 0x257   : > { %v779_v38 = vpop.permute.xlu1 %778  ;;  %v931_v8 = vsel %vm408_vm2, %v930_v43, %v926_v11 }
 0x258   : > { %v916_v50 = vrot.slane %v779_v38, %v2077_v51 }
 0x25a   : > { %v917_v30 = vsel %vm415_vm3, %v916_v50, %v912_v16  ;;  %v2794_v16 = vsub.s32 1, %v2051_v34 }
 0x25b   : > { %v794_v20 = vpop.permute.xlu1 %793 }
 0x25c   : > { %v940_v25 = vrot.slane %v794_v20, %v2054_v40  ;;  %v958_v20 = vsel %vm554_vm6, %v879_v53, %v957_v3 }
 0x25d   : > { %v959_v62 = vsel %vm556_vm7, %v898_v55, %v958_v20  ;;  %v2797_v20 = vsub.s32 2, %v2051_v34 }
 0x25e   : > { %v945_v35 = vsel %vm401_vm1, %v944_v24, %v940_v25  ;;  %v960_v52 = vsel %vm558_vm8, %v917_v30, %v959_v62  ;;  %v2792_v24 = vsub.s32 3, %v2051_v34  ;;  %v2795_v30 = vsub.s32 5, %v2051_v34 }
 0x25f   : > { %v791_v19 = vpop.permute.xlu1 %790  ;;  %v950_v61 = vsel %vm408_vm2, %v949_v6, %v945_v35 }
 0x260   : > { %v935_v38 = vrot.slane %v791_v19, %v2077_v51 }
 0x262   : > { %v936_v17 = vsel %vm415_vm3, %v935_v38, %v931_v8  ;;  %v2793_v38 = vsub.s32 4, %v2051_v34 }
 0x263   : > { %v803_v7 = vpop.permute.xlu1 %802  ;;  %v961_v1 = vsel %vm560_vm9, %v936_v17, %v960_v52 }
 0x264   : > { %v954_v32 = vrot.slane %v803_v7, %v2077_v51 }
 0x266   : > { %v955_v42 = vsel %vm415_vm3, %v954_v32, %v950_v61  ;;  %v2798_v32 = vsub.s32 7, %v2051_v34 }
 0x267   : > { %v962_v49 = vsel %vm562_vm10, %v955_v42, %v961_v1  ;;  %v1053_v42 = vld [vmem:[%s2765_s1 + $0x50] sm:$0xff]  ;;  %v1052_v1 = vld [vmem:[%s2765_s1 + $0x48] sm:$0xff] }
 0x268   : > { %v964_v28 = vsel %vm565_vm11, %v962_v49, 0.0  ;;  %v1051_v49 = vld [vmem:[%s2765_s1 + $0x40] sm:$0xff] }
 0x269   : > { %965 = vadd.xlane.f32.xlu0 %v964_v28  ;;  %v1050_v28 = vld [vmem:[%s2765_s1 + $0x38] sm:$0xff] }
 0x2f2   : > { %v966_v54 = vpop.xlane.xlu0 %965 }
 0x2f3   : > { %v967_v50 = vmul.f32 0.03125, %v966_v54  ;;  %v1049_v54 = vld [vmem:[%s2765_s1 + $0x30] sm:$0xff] }
 0x2f5   : > { %v968_v25 = vadd.f32 1e-05, %v967_v50  ;;  %v1048_v50 = vld [vmem:[%s2765_s1 + $0x28] sm:$0xff] }
 0x2f7   : > { %1774 = vrsqrt.f32 %v968_v25  ;;  %v1047_v25 = vld [vmem:[%s2765_s1 + $0x20] sm:$0xff] }
 0x304   : > { %v1775_v43 = vpop.eup %1774 }
 0x305   : > { %v974_v29 = vrot.slane %v1775_v43, %v2791_v56  ;;  %v2511_v18 = vrot.slane %v1775_v43, %v2792_v24  ;;  %v2518_v55 = vrot.slane %v1775_v43, %v2793_v38  ;;  %v2530_v35 = vrot.slane %v1775_v43, %v2795_v30  ;;  %v1046_v56 = vld [vmem:[%s2765_s1 + $0x18] sm:$0xff]  ;;  %v1043_v38 = vld [vmem:[%s2765_s1] sm:$0xff] }
 0x306   : > { %v982_v17 = vrot.slane %v1775_v43, %v2797_v20  ;;  %v2558_v61 = vrot.slane %v1775_v43, %v2798_v32 }
 0x307   : > { %v1014_v11 = vmul.f32 %v974_v29, %v2346_v31  ;;  %v1011_v19 = vmul.f32 %v974_v29, %v2250_v57  ;;  %v1025_v53 = vmul.f32 %v2511_v18, %v2291_v15  ;;  %v1012_v59 = vmul.f32 %v974_v29, %v2247_v37 }
 0x308   : > { %v978_v31 = vrot.slane %v1775_v43, %v2794_v16  ;;  %v1028_v57 = vmul.f32 %v2518_v55, %v2303_v10  ;;  %v1029_v15 = vmul.f32 %v2518_v55, %v2317_v14  ;;  %v1032_v8 = vmul.f32 %v2530_v35, %v2329_v60 }
 0x309   : > { %1101 = vperm.xlu0 %1773, %v1014_v11   ;;  %1092 = vperm.xlu1 %1772, %v1011_v19   ;;  %v1013_v10 = vmul.f32 %v974_v29, %v2294_v45  ;;  %v1058_v45 = vld [vmem:[%s2765_s1 + $0x78] sm:$0xff]  ;;  %v1876_v60 = vmov 0.0   ;;  %v1020_v62 = vmul.f32 %v982_v17, %v2333_v26  ;;  %v1041_v26 = vmul.f32 %v2558_v61, %v2389_v41  ;;  %v1045_v11 = vld [vmem:[%s2765_s1 + $0x10] sm:$0xff]  ;;  %v2801_v19 = vld [vmem:[#allocation10_spill] sm:$0xff] }
 0x30a   : > { %v1015_v3 = vmul.f32 %v978_v31, %v2266_v46  ;;  %v1016_v37 = vmul.f32 %v978_v31, %v2278_v2  ;;  %v1033_v46 = vmul.f32 %v2530_v35, %v2343_v5  ;;  %v1017_v14 = vmul.f32 %v978_v31, %v2306_v27  ;;  %1686 = vmatprep.subr.mxu0 %v1876_v60  ;;  %v1054_v41 = vld [vmem:[%s2765_s1 + $0x58] sm:$0xff] }
 0x30b   : > { %v2796_v2 = vsub.s32 6, %v2051_v34  ;;  %v1019_v27 = vmul.f32 %v982_v17, %v2321_v48  ;;  %1687 = vmatpush3.xpose.msk.msra.mxu0 %vm565_vm11, %v1058_v45  ;;  %v1040_v48 = vmul.f32 %v2558_v61, %v2378_v36  ;;  %v1056_v34 = vld [vmem:[%s2765_s1 + $0x68] sm:$0xff]  ;;  %v1021_v52 = vmul.f32 %v982_v17, %v2263_v63  ;;  %v1055_v36 = vld [vmem:[%s2765_s1 + $0x60] sm:$0xff]  ;;  %1718 = vmatprep.mubr.msk.f32.mxu0 %vm1877_vm12, %v1876_v60 }
 0x30c   : > { %1688 = vmatprep.subr.mxu0 %v1876_v60  ;;  %v1024_v63 = vmul.f32 %v2511_v18, %v2275_v4  ;;  %v1027_v4 = vmul.f32 %v2518_v55, %v2393_v0  ;;  %v1031_v0 = vmul.f32 %v2530_v35, %v2406_v23 }
 0x30d   : > { %1134 = vperm.xlu0 %1773, %v1025_v53   ;;  %1095 = vperm.xlu1 %1772, %v1012_v59   ;;  %v2540_v6 = vrot.slane %v1775_v43, %v2796_v2  ;;  %v2802_v53 = vld [vmem:[#allocation11_spill] sm:$0xff] }
 0x30e   : > { %v1042_v59 = vmul.f32 %v2558_v61, %v2802_v53 }
 0x30f   : > { %v1036_v5 = vmul.f32 %v2540_v6, %v2354_v9  ;;  %v1037_v7 = vmul.f32 %v2540_v6, %v2367_v13  ;;  %v1057_v9 = vld [vmem:[%s2765_s1 + $0x70] sm:$0xff]  ;;  %v1018_v13 = vmul.f32 %v978_v31, %v2357_v12  ;;  %v1023_v12 = vmul.f32 %v2511_v18, %v2371_v39 }
 0x310   : > { %1689 = vmatpush3.xpose.msk.msra.mxu0 %vm565_vm11, %v1057_v9  ;;  %v1022_v39 = vmul.f32 %v982_v17, %v2382_v21  ;;  %v1026_v21 = vmul.f32 %v2511_v18, %v2401_v33  ;;  %v1030_v33 = vmul.f32 %v2518_v55, %v2412_v22  ;;  %v1035_v23 = vmul.f32 %v2540_v6, %v2417_v58  ;;  %v2799_v22 = vld [vmem:[#allocation8_spill] sm:$0xff]  ;;  %v2800_v58 = vld [vmem:[#allocation9_spill] sm:$0xff]  ;;  %v1044_v18 = vld [vmem:[%s2765_s1 + $0x8] sm:$0xff] }
 0x311   : > { %1143 = vperm.xlu0 %1773, %v1028_v57   ;;  %1104 = vperm.xlu1 %1772, %v1015_v3   ;;  %v1034_v43 = vmul.f32 %v2530_v35, %v2799_v22  ;;  %v1039_v29 = vmul.f32 %v2558_v61, %v2800_v58  ;;  %v1038_v24 = vmul.f32 %v2540_v6, %v2801_v19 }
 0x312   : > { %1690 = vmatprep.subr.mxu0 %v1876_v60 }
 0x314   : > { %1691 = vmatpush3.xpose.msk.msra.mxu0 %vm565_vm11, %v1056_v34 }
 0x315   : > { %1146 = vperm.xlu0 %1773, %v1029_v15   ;;  %1107 = vperm.xlu1 %1772, %v1016_v37  }
 0x316   : > { %1692 = vmatprep.subr.mxu0 %v1876_v60 }
 0x318   : > { %1693 = vmatpush3.xpose.msk.msra.mxu0 %vm565_vm11, %v1055_v36 }
 0x319   : > { %1155 = vperm.xlu0 %1773, %v1032_v8   ;;  %1098 = vperm.xlu1 %1772, %v1013_v10  }
 0x31a   : > { %1694 = vmatprep.subr.mxu0 %v1876_v60 }
 0x31c   : > { %1695 = vmatpush3.xpose.msk.msra.mxu0 %vm565_vm11, %v1054_v41 }
 0x31d   : > { %1158 = vperm.xlu0 %1773, %v1033_v46   ;;  %1110 = vperm.xlu1 %1772, %v1017_v14  }
 0x31e   : > { %1696 = vmatprep.subr.mxu0 %v1876_v60 }
 0x320   : > { %1697 = vmatpush3.xpose.msk.msra.mxu0 %vm565_vm11, %v1053_v42 }
 0x321   : > { %1167 = vperm.xlu0 %1773, %v1036_v5   ;;  %1116 = vperm.xlu1 %1772, %v1019_v27  }
 0x322   : > { %1698 = vmatprep.subr.mxu0 %v1876_v60 }
 0x324   : > { %1699 = vmatpush3.xpose.msk.msra.mxu0 %vm565_vm11, %v1052_v1 }
 0x325   : > { %1170 = vperm.xlu0 %1773, %v1037_v7   ;;  %1119 = vperm.xlu1 %1772, %v1020_v62  }
 0x326   : > { %1700 = vmatprep.subr.mxu0 %v1876_v60 }
 0x328   : > { %1701 = vmatpush3.xpose.msk.msra.mxu0 %vm565_vm11, %v1051_v49 }
 0x329   : > { %1179 = vperm.xlu0 %1773, %v1040_v48   ;;  %1113 = vperm.xlu1 %1772, %v1018_v13  }
 0x32a   : > { %1702 = vmatprep.subr.mxu0 %v1876_v60 }
 0x32c   : > { %1703 = vmatpush3.xpose.msk.msra.mxu0 %vm565_vm11, %v1050_v28 }
 0x32d   : > { %1182 = vperm.xlu0 %1773, %v1041_v26   ;;  %1122 = vperm.xlu1 %1772, %v1021_v52  }
 0x32e   : > { %1704 = vmatprep.subr.mxu0 %v1876_v60 }
 0x330   : > { %1705 = vmatpush3.xpose.msk.msra.mxu0 %vm565_vm11, %v1049_v54 }
 0x331   : > { %1128 = vperm.xlu1 %1772, %v1023_v12   ;;  %1706 = vmatprep.subr.mxu0 %v1876_v60 }
 0x334   : > { %1707 = vmatpush3.xpose.msk.msra.mxu0 %vm565_vm11, %v1048_v50 }
 0x335   : > { %1131 = vperm.xlu1 %1772, %v1024_v63   ;;  %1708 = vmatprep.subr.mxu0 %v1876_v60 }
 0x338   : > { %1709 = vmatpush3.xpose.msk.msra.mxu0 %vm565_vm11, %v1047_v25 }
 0x339   : > { %1125 = vperm.xlu1 %1772, %v1022_v39   ;;  %1710 = vmatprep.subr.mxu0 %v1876_v60 }
 0x33c   : > { %1711 = vmatpush3.xpose.msk.msra.mxu0 %vm565_vm11, %v1046_v56 }
 0x33d   : > { %1140 = vperm.xlu1 %1772, %v1027_v4   ;;  %1712 = vmatprep.subr.mxu0 %v1876_v60 }
 0x340   : > { %1713 = vmatpush3.xpose.msk.msra.mxu0 %vm565_vm11, %v1045_v11 }
 0x341   : > { %1137 = vperm.xlu1 %1772, %v1026_v21   ;;  %1714 = vmatprep.subr.mxu0 %v1876_v60 }
 0x344   : > { %1715 = vmatpush3.xpose.msk.msra.mxu0 %vm565_vm11, %v1044_v18 }
 0x345   : > { %1152 = vperm.xlu1 %1772, %v1031_v0   ;;  %1716 = vmatprep.subr.mxu0 %v1876_v60 }
 0x348   : > { %1717 = vmatpush3.xpose.msk.msra.mxu0 %vm565_vm11, %v1043_v38 }
 0x349   : > { %1149 = vperm.xlu1 %1772, %v1030_v33  }
 0x34d   : > { %1164 = vperm.xlu1 %1772, %v1035_v23  }
 0x351   : > { %1161 = vperm.xlu1 %1772, %v1034_v43  }
 0x355   : > { %1176 = vperm.xlu1 %1772, %v1039_v29  }
 0x359   : > { %1173 = vperm.xlu1 %1772, %v1038_v24  }
 0x35d   : > { %1185 = vperm.xlu1 %1772, %v1042_v59  }
 0x384   : > { %v1093_v55 = vpop.permute.xlu1 %1092  ;;  %v1102_v2 = vpop.permute.xlu0 %1101 }
 0x385   : > { %v1190_v31 = vrot.slane %v1093_v55, %v2054_v40  ;;  %v1204_v5 = vrot.slane %v1102_v2, %v2077_v51 }
 0x388   : > { %v1096_v16 = vpop.permute.xlu1 %1095  ;;  %v1135_v27 = vpop.permute.xlu0 %1134 }
 0x389   : > { %v1194_v57 = vrot.slane %v1096_v16, %v2061_v44  ;;  %v1256_v54 = vrot.slane %v1135_v27, %v2068_v47 }
 0x38b   : > { %v1195_v3 = vsel %vm401_vm1, %v1194_v57, %v1190_v31 }
 0x38c   : > { %v1105_v15 = vpop.permute.xlu1 %1104  ;;  %v1144_v13 = vpop.permute.xlu0 %1143 }
 0x38d   : > { %v1209_v30 = vrot.slane %v1105_v15, %v2054_v40  ;;  %v1270_v23 = vrot.slane %v1144_v13, %v2061_v44 }
 0x390   : > { %v1108_v37 = vpop.permute.xlu1 %1107  ;;  %v1147_v52 = vpop.permute.xlu0 %1146 }
 0x391   : > { %v1213_v35 = vrot.slane %v1108_v37, %v2061_v44  ;;  %v1275_v58 = vrot.slane %v1147_v52, %v2068_v47 }
 0x393   : > { %v1214_v8 = vsel %vm401_vm1, %v1213_v35, %v1209_v30 }
 0x394   : > { %v1099_v10 = vpop.permute.xlu1 %1098  ;;  %v1156_v12 = vpop.permute.xlu0 %1155 }
 0x395   : > { %v1199_v6 = vrot.slane %v1099_v10, %v2068_v47  ;;  %v1289_v18 = vrot.slane %v1156_v12, %v2061_v44 }
 0x397   : > { %v1200_v45 = vsel %vm408_vm2, %v1199_v6, %v1195_v3 }
 0x398   : > { %v1111_v46 = vpop.permute.xlu1 %1110  ;;  %v1205_v32 = vsel %vm415_vm3, %v1204_v5, %v1200_v45  ;;  %v1159_v42 = vpop.permute.xlu0 %1158 }
 0x399   : > { %v1218_v17 = vrot.slane %v1111_v46, %v2068_v47  ;;  %v1294_v53 = vrot.slane %v1159_v42, %v2068_v47 }
 0x39b   : > { %v1219_v62 = vsel %vm408_vm2, %v1218_v17, %v1214_v8 }
 0x39c   : > { %v1117_v14 = vpop.permute.xlu1 %1116  ;;  %v1168_v1 = vpop.permute.xlu0 %1167 }
 0x39d   : > { %v1228_v29 = vrot.slane %v1117_v14, %v2054_v40  ;;  %v1308_v55 = vrot.slane %v1168_v1, %v2061_v44 }
 0x3a0   : > { %v1120_v20 = vpop.permute.xlu1 %1119  ;;  %v1171_v21 = vpop.permute.xlu0 %1170 }
 0x3a1   : > { %v1232_v33 = vrot.slane %v1120_v20, %v2061_v44  ;;  %v1313_v35 = vrot.slane %v1171_v21, %v2068_v47 }
 0x3a3   : > { %v1233_v16 = vsel %vm401_vm1, %v1232_v33, %v1228_v29 }
 0x3a4   : > { %v1114_v60 = vpop.permute.xlu1 %1113  ;;  %v1180_v25 = vpop.permute.xlu0 %1179 }
 0x3a5   : > { %v1223_v7 = vrot.slane %v1114_v60, %v2077_v51  ;;  %v1327_v2 = vrot.slane %v1180_v25, %v2061_v44 }
 0x3a7   : > { %v1224_v61 = vsel %vm415_vm3, %v1223_v7, %v1219_v62 }
 0x3a8   : > { %v1339_v9 = vsel %vm550_vm4, %v1224_v61, %v1205_v32  ;;  %v1123_v48 = vpop.permute.xlu1 %1122  ;;  %v1183_v6 = vpop.permute.xlu0 %1182 }
 0x3a9   : > { %v1237_v22 = vrot.slane %v1123_v48, %v2068_v47 }
 0x3ab   : > { %v1238_v3 = vsel %vm408_vm2, %v1237_v22, %v1233_v16 }
 0x3ac   : > { %v1129_v34 = vpop.permute.xlu1 %1128 }
 0x3ad   : > { %v1247_v43 = vrot.slane %v1129_v34, %v2054_v40 }
 0x3b0   : > { %v1132_v26 = vpop.permute.xlu1 %1131 }
 0x3b1   : > { %v1251_v0 = vrot.slane %v1132_v26, %v2061_v44  ;;  %v1332_v44 = vrot.slane %v1183_v6, %v2068_v47 }
 0x3b3   : > { %v1252_v59 = vsel %vm401_vm1, %v1251_v0, %v1247_v43 }
 0x3b4   : > { %v1126_v36 = vpop.permute.xlu1 %1125  ;;  %v1257_v10 = vsel %vm408_vm2, %v1256_v54, %v1252_v59 }
 0x3b5   : > { %v1242_v11 = vrot.slane %v1126_v36, %v2077_v51 }
 0x3b7   : > { %v1243_v8 = vsel %vm415_vm3, %v1242_v11, %v1238_v3 }
 0x3b8   : > { %v1141_v41 = vpop.permute.xlu1 %1140  ;;  %v1340_v5 = vsel %vm552_vm5, %v1243_v8, %v1339_v9 }
 0x3b9   : > { %v1266_v50 = vrot.slane %v1141_v41, %v2054_v40 }
 0x3bb   : > { %v1271_v31 = vsel %vm401_vm1, %v1270_v23, %v1266_v50 }
 0x3bc   : > { %v1138_v63 = vpop.permute.xlu1 %1137  ;;  %v1276_v17 = vsel %vm408_vm2, %v1275_v58, %v1271_v31 }
 0x3bd   : > { %v1261_v38 = vrot.slane %v1138_v63, %v2077_v51 }
 0x3bf   : > { %v1262_v20 = vsel %vm415_vm3, %v1261_v38, %v1257_v10 }
 0x3c0   : > { %v1153_v39 = vpop.permute.xlu1 %1152  ;;  %v1341_v32 = vsel %vm554_vm6, %v1262_v20, %v1340_v5 }
 0x3c1   : > { %v1285_v56 = vrot.slane %v1153_v39, %v2054_v40 }
 0x3c3   : > { %v1290_v15 = vsel %vm401_vm1, %v1289_v18, %v1285_v56 }
 0x3c4   : > { %v1150_v4 = vpop.permute.xlu1 %1149  ;;  %v1295_v60 = vsel %vm408_vm2, %v1294_v53, %v1290_v15 }
 0x3c5   : > { %v1280_v57 = vrot.slane %v1150_v4, %v2077_v51 }
 0x3c8   : > { %v1165_v49 = vpop.permute.xlu1 %1164 }
 0x3c9   : > { %v1304_v19 = vrot.slane %v1165_v49, %v2054_v40 }
 0x3cb   : > { %v1309_v46 = vsel %vm401_vm1, %v1308_v55, %v1304_v19 }
 0x3cc   : > { %v1162_v28 = vpop.permute.xlu1 %1161  ;;  %v1314_v62 = vsel %vm408_vm2, %v1313_v35, %v1309_v46 }
 0x3cd   : > { %v1299_v37 = vrot.slane %v1162_v28, %v2077_v51 }
 0x3cf   : > { %v1300_v27 = vsel %vm415_vm3, %v1299_v37, %v1295_v60 }
 0x3d0   : > { %v1177_v24 = vpop.permute.xlu1 %1176 }
 0x3d1   : > { %v1323_v30 = vrot.slane %v1177_v24, %v2054_v40  ;;  %v1281_v40 = vsel %vm415_vm3, %v1280_v57, %v1276_v17 }
 0x3d2   : > { %v1342_v13 = vsel %vm556_vm7, %v1281_v40, %v1341_v32 }
 0x3d3   : > { %v1328_v7 = vsel %vm401_vm1, %v1327_v2, %v1323_v30  ;;  %v1343_v9 = vsel %vm558_vm8, %v1300_v27, %v1342_v13 }
 0x3d4   : > { %v1174_v14 = vpop.permute.xlu1 %1173  ;;  %v1333_v26 = vsel %vm408_vm2, %v1332_v44, %v1328_v7 }
 0x3d5   : > { %v1318_v45 = vrot.slane %v1174_v14, %v2077_v51 }
 0x3d7   : > { %v1319_v61 = vsel %vm415_vm3, %v1318_v45, %v1314_v62 }
 0x3d8   : > { %v1186_v48 = vpop.permute.xlu1 %1185  ;;  %v1344_v36 = vsel %vm560_vm9, %v1319_v61, %v1343_v9 }
 0x3d9   : > { %v1337_v34 = vrot.slane %v1186_v48, %v2077_v51 }
 0x3db   : > { %v1338_v52 = vsel %vm415_vm3, %v1337_v34, %v1333_v26 }
 0x3dc   : > { %v1345_v47 = vsel %vm562_vm10, %v1338_v52, %v1344_v36 }
 0x3dd   : > { %1719 = vmatmul.mubr.msk.f32.vlgmr.msra.gmra.mxu0 %vm565_vm11, %v1345_v47 }
 0x49d   : > { %v1462_v12 = vpop.f32.mrf.mxu0 }
 0x49e   : > { %v1466_v41 = vmul.f32 %v1462_v12, %v1462_v12 }
 0x49f   : > { %v1720_v63 = vpop.f32.mrf.mxu0 }
 0x4a0   : > { %1467 = vadd.xlane.f32.xlu0 %v1466_v41 }
 0x529   : > { %v1468_v42 = vpop.xlane.xlu0 %1467 }
 0x52a   : > { %v1469_v51 = vmax.f32 %v1468_v42, 1e-24 }
 0x52c   : > { %1776 = vrsqrt.f32 %v1469_v51 }
 0x539   : > { %v1777_v39 = vpop.eup %1776 }
 0x53a   : > { %v1471_v1 = vmul.f32 %v1777_v39, %v1462_v12 }
 0x53c   : > { %1472 = vst [vmem:[%s162_s5] sm:$0xff] %v1471_v1 }
 0x53d   : > { %1819 = shalt.err (!%p1816_p10)
}
 0x53e   : > { %s1820_s14 = scalar_lea.hbm %s1485_s30, 128  ;;  %s1824_s17 = scalar_lea.hbm %s2766_s2, 256 }
 0x53f   : > { %p1821_p0 = scmp.ne.s32.totalorder %s1485_s30, %s1820_s14  ;;  %p1825_p1 = scmp.lt.s32.totalorder %s1485_s30, %s2766_s2 }
 0x540   : > { %p1826_p3 = scmp.lt.s32.totalorder %s1824_s17, %s1820_s14 }
 0x541   : > { %p1822_p2 = pnand %p1821_p0, %p2803_p12 }
 0x542   : > { %p1827_p6 = por %p1826_p3, %p1825_p1 }
 0x543   : > { %p1823_p9 = pneg %p1822_p2 }
 0x545   : > { %p1828_p11 = pnand %p1827_p6, %p1823_p9 }
 0x547   : > { %1831 = shalt.err (!%p1828_p11)
}
 0x548   : > { %1723 = dma.vmem_to_hbm [thread:$0]  (%p2803_p12), %s1488_s6, 128, %s1485_s30, %s1474_s3  }
 0x549 PF: > { %s1499_s24 = sand.u32 1, %s1858_s9   ;;  %p2804_p13 = scmp.ne.s32.totalorder %s2784_s22, 0 }
 0x54a   : > { %p2805_p4 = scmp.ge.s32.totalorder %s1870_s12, 2  ;;  %s1500_s25 = scalar_lea.sflag [#allocation4], %s1499_s24 }
 0x54c   : > { %p1730_p5 = pnand %p2805_p4, %p2804_p13 }
 0x54e   : > { %p1731_p7 = pneg %p1730_p5 }
 0x550   : > { %1853 = dma.done.wait (%p1731_p7), %s1500_s25, 128  }
 0x551   : > { %1855 = vsyncadd (%p1731_p7), %s1500_s25, 4294967168  ;;  %p15_p8 = scmp.ge.s32.totalorder %s1919_s15, 4   ;;  %s2806_s9 = smov %s1862_s10 }
 0x552   : > { %s2807_s10 = smov %s1866_s11  ;;  %s2808_s11 = smov %s1931_s18 }
 0x553   : > { %s2809_s12 = smov %s1919_s15  ;;  %17 = sbr.rel (!%p15_p8) target bundleno = 5 (0x5), region = 73 }
 0x558   :  { %1505 = vsyncpa [#allocation3], 1 }
 0x559   :  { %1507 = vsyncpa [#allocation3 + $0x1], 1 }
 0x55a   :  { %1508 = vsyncpa [#allocation4], 1 }
 0x55b   :  { %1510 = vsyncpa [#allocation4 + $0x1], 1 }

</bundles_post_ra>
